<compile_context>
chip_gen: v7x
topology: tpu7x:2x2x1
jax: 0.10.0
libtpu: 0.0.40
codegen_flags: <defaults>
</compile_context>

<pallas_src>
import functools
import math

import jax
import jax.numpy as jnp
from jax import lax
from jax.experimental import pallas as pl
from jax.experimental.pallas import tpu as pltpu


# ----------------------------- Fused MHA kernel ----------------------------- #

def mha_head_kernel(xq_ref, xk_ref, xv_ref,
                    wq_ref, wk_ref, wv_ref, wo_ref,
                    bq_ref, bk_ref, bv_ref, bo_ref,
                    o_ref,
                    acc_ref, kh_ref, vh_ref,
                    *, sk_tile):
    """One grid step = one (batch, head) pair.

    xq: (1, Sq, D); xk/xv: (1, Sk, D); wq/wk/wv: (1, D, d_k) per-head blocks
    (wq already scaled by 1/sqrt(d_k)); wo: (1, d_k, D) per-head row block;
    bq/bk/bv: (1, 1, d_k); bo: (1, D); o: (1, Sq, D).
    Scratch: acc (Sq, D) f32 cross-head accumulator, kh/vh (Sk, d_k) per-head
    projected keys/values (compute dtype).
    """
    hd = pl.program_id(1)
    cdt = wq_ref.dtype                       # MXU compute dtype (bf16 or f32)

    # Initialize the cross-head output accumulator with the output bias.
    @pl.when(hd == 0)
    def _():
        acc_ref[...] = jnp.broadcast_to(bo_ref[...], acc_ref.shape).astype(jnp.float32)

    xq = xq_ref[0].astype(cdt)               # (Sq, D)
    xk = xk_ref[0].astype(cdt)               # (Sk, D)
    xv = xv_ref[0].astype(cdt)               # (Sk, D)

    # Per-head projections (softmax scale already folded into Wq / bq).
    q = jnp.dot(xq, wq_ref[0], preferred_element_type=jnp.float32) + bq_ref[0]
    kh_ref[...] = (jnp.dot(xk, wk_ref[0], preferred_element_type=jnp.float32)
                   + bk_ref[0]).astype(kh_ref.dtype)
    vh_ref[...] = (jnp.dot(xv, wv_ref[0], preferred_element_type=jnp.float32)
                   + bv_ref[0]).astype(vh_ref.dtype)
    q = q.astype(cdt)                        # cast once for the score matmuls

    sq, d_k = q.shape
    sk = kh_ref.shape[0]
    num_sk_tiles = sk // sk_tile             # static python int

    # Flash-style online softmax over Sk tiles (never materializes (Sq, Sk)).
    def body(i, carry):
        m, l, acc = carry
        start = pl.multiple_of(i * sk_tile, sk_tile)
        k_t = kh_ref[pl.ds(start, sk_tile), :]                    # (TSK, d_k)
        v_t = vh_ref[pl.ds(start, sk_tile), :]
        s = lax.dot_general(q, k_t, (((1,), (1,)), ((), ())),
                            preferred_element_type=jnp.float32)   # (Sq, TSK)
        m_new = jnp.maximum(m, jnp.max(s, axis=-1, keepdims=True))
        alpha = jnp.exp(m - m_new)
        p = jnp.exp(s - m_new)
        l_new = alpha * l + jnp.sum(p, axis=-1, keepdims=True)
        acc_new = alpha * acc + jnp.dot(p.astype(cdt), v_t,
                                        preferred_element_type=jnp.float32)
        return m_new, l_new, acc_new

    carry0 = (jnp.full((sq, 1), -jnp.inf, jnp.float32),
              jnp.zeros((sq, 1), jnp.float32),
              jnp.zeros((sq, d_k), jnp.float32))
    _, l, o_h = lax.fori_loop(0, num_sk_tiles, body, carry0,
                              unroll=num_sk_tiles <= 8)

    # Deferred softmax normalization: EUP reciprocal on the small (Sq, 1) sums.
    o_h = o_h * pl.reciprocal(l, approx=True)                     # (Sq, d_k) f32

    # Output projection: accumulate this head's Wo row-block contribution.
    acc_ref[...] += jnp.dot(o_h.astype(cdt), wo_ref[0],
                            preferred_element_type=jnp.float32)

    @pl.when(hd == pl.num_programs(1) - 1)
    def _():
        o_ref[0] = acc_ref[...].astype(o_ref.dtype)


# ------------------------------ Weight prep (one-time) ----------------------- #

def prepare_mha_params(params, h, compute_dtype=jnp.bfloat16):
    """One-time prep: transpose to x @ W layout, split heads onto a leading axis
    (so BlockSpecs stream one head's weight block per grid step), fold the
    1/sqrt(d_k) softmax scale into Wq/bq, and cast MXU operands to compute dtype.
    Call once at parameter-load time, NOT per forward call."""
    d_model = params["wq"].shape[0]
    assert d_model % h == 0
    d_k = d_model // h
    scale = 1.0 / math.sqrt(d_k)

    def in_proj(w, b, s=1.0):
        # nn.Linear: y = x @ W.T + b.  Columns [hd*d_k, (hd+1)*d_k) of W.T are
        # head hd's output features -> (h, D, d_k) head-major weight blocks.
        wt = (w.T * s).reshape(d_model, h, d_k).transpose(1, 0, 2)
        return (wt.astype(compute_dtype),
                (b * s).reshape(h, 1, d_k).astype(jnp.float32))

    wq, bq = in_proj(params["wq"], params["bq"], scale)
    wk, bk = in_proj(params["wk"], params["bk"])
    wv, bv = in_proj(params["wv"], params["bv"])
    # Rows [hd*d_k, (hd+1)*d_k) of Wo.T are head hd's input features -> (h, d_k, D).
    wo = params["wo"].T.reshape(h, d_k, d_model).astype(compute_dtype)
    bo = params["bo"].reshape(1, d_model).astype(jnp.float32)
    return dict(wq=wq, wk=wk, wv=wv, wo=wo, bq=bq, bk=bk, bv=bv, bo=bo,
                h=h, d_k=d_k, compute_dtype=compute_dtype)


def _pick_sk_tile(sk, target=512):
    """Largest 128-multiple divisor <= target, or the full Sk for small inputs."""
    if sk <= target:
        return sk
    for t in (512, 384, 256, 128):
        if sk % t == 0:
            return t
    return sk   # TODO(synk): pad/mask ragged Sk instead of one monolithic tile.


# --------------------------------- Wrapper ----------------------------------- #

def multi_head_attention(query, key, value, prep, mask=None):
    """Matches MultiHeadAttention.forward (mask=None, dropout = eval identity)."""
    assert mask is None   # TODO(synk): mask path not implemented.
    B, Sq, D = query.shape
    Sk = key.shape[1]
    h, d_k = prep["h"], prep["d_k"]
    cdt = prep["compute_dtype"]
    sk_tile = _pick_sk_tile(Sk)

    kernel = functools.partial(mha_head_kernel, sk_tile=sk_tile)

    return pl.pallas_call(
        kernel,
        out_shape=jax.ShapeDtypeStruct((B, Sq, D), query.dtype),
        grid=(B, h),
        in_specs=[
            pl.BlockSpec((1, Sq, D), lambda b, hd: (b, 0, 0)),    # query (DMA'd once per batch)
            pl.BlockSpec((1, Sk, D), lambda b, hd: (b, 0, 0)),    # key
            pl.BlockSpec((1, Sk, D), lambda b, hd: (b, 0, 0)),    # value
            pl.BlockSpec((1, D, d_k), lambda b, hd: (hd, 0, 0)),  # Wq^T head block (scaled)
            pl.BlockSpec((1, D, d_k), lambda b, hd: (hd, 0, 0)),  # Wk^T head block
            pl.BlockSpec((1, D, d_k), lambda b, hd: (hd, 0, 0)),  # Wv^T head block
            pl.BlockSpec((1, d_k, D), lambda b, hd: (hd, 0, 0)),  # Wo^T head row-block
            pl.BlockSpec((1, 1, d_k), lambda b, hd: (hd, 0, 0)),  # bq head block (scaled)
            pl.BlockSpec((1, 1, d_k), lambda b, hd: (hd, 0, 0)),  # bk head block
            pl.BlockSpec((1, 1, d_k), lambda b, hd: (hd, 0, 0)),  # bv head block
            pl.BlockSpec((1, D), lambda b, hd: (0, 0)),           # bo
        ],
        out_specs=pl.BlockSpec((1, Sq, D), lambda b, hd: (b, 0, 0)),
        scratch_shapes=[
            pltpu.VMEM((Sq, D), jnp.float32),   # cross-head output accumulator
            pltpu.VMEM((Sk, d_k), cdt),         # this head's projected keys
            pltpu.VMEM((Sk, d_k), cdt),         # this head's projected values
        ],
        compiler_params=pltpu.CompilerParams(
            dimension_semantics=("parallel", "arbitrary"),
            vmem_limit_bytes=48 * 1024 * 1024),
    )(query, key, value,
      prep["wq"], prep["wk"], prep["wv"], prep["wo"],
      prep["bq"], prep["bk"], prep["bv"], prep["bo"])


# ------------------------------ Params & reference --------------------------- #

def init_mha_params(key, d_model):
    """Deterministic init mimicking PyTorch nn.Linear default (uniform +-1/sqrt(fan_in))."""
    bound = 1.0 / math.sqrt(d_model)
    params = {}
    names = ["q", "k", "v", "o"]
    keys = jax.random.split(key, 2 * len(names))
    for n, (kw, kb) in zip(names, zip(keys[::2], keys[1::2])):
        params["w" + n] = jax.random.uniform(
            kw, (d_model, d_model), jnp.float32, -bound, bound)
        params["b" + n] = jax.random.uniform(
            kb, (d_model,), jnp.float32, -bound, bound)
    return params


def mha_reference(query, key, value, params, h):
    """Pure-JAX reference (mask=None, dropout=identity)."""
    B, Sq, d_model = query.shape
    d_k = d_model // h

    def lin(x, w, b):
        return x @ w.T + b

    def split(x):
        return x.reshape(B, -1, h, d_k).transpose(0, 2, 1, 3)

    q = split(lin(query, params["wq"], params["bq"]))
    k = split(lin(key, params["wk"], params["bk"]))
    v = split(lin(value, params["wv"], params["bv"]))
    scores = jnp.einsum("bhqd,bhkd->bhqk", q, k) / math.sqrt(d_k)
    attn = jax.nn.softmax(scores, axis=-1)
    out = jnp.einsum("bhqk,bhkd->bhqd", attn, v)
    out = out.transpose(0, 2, 1, 3).reshape(B, Sq, d_model)
    return lin(out, params["wo"], params["bo"])


# ------------------------------------ Main ----------------------------------- #

if __name__ == "__main__":
    B, S, d_model, h = 2, 8, 32, 4

    root = jax.random.PRNGKey(0)
    k_q, k_k, k_v, k_p = jax.random.split(root, 4)
    query = jax.random.normal(k_q, (B, S, d_model), jnp.float32)
    key = jax.random.normal(k_k, (B, S, d_model), jnp.float32)
    value = jax.random.normal(k_v, (B, S, d_model), jnp.float32)
    params = init_mha_params(k_p, d_model)
    ref = mha_reference(query, key, value, params, h)

    # f32 MXU path: tight check against the pure-JAX reference.
    prep_f32 = prepare_mha_params(params, h, compute_dtype=jnp.float32)
    out = jax.block_until_ready(multi_head_attention(query, key, value, prep_f32))
    assert out.shape == (B, S, d_model)
    assert jnp.allclose(out, ref, atol=1e-3, rtol=1e-3), "f32 path mismatch vs reference"

    # bf16 MXU path (default; the fast path on v6e/v7x): validated, loose tolerance.
    prep_bf16 = prepare_mha_params(params, h)   # compute_dtype = bf16
    out_bf16 = jax.block_until_ready(multi_head_attention(query, key, value, prep_bf16))
    assert out_bf16.shape == (B, S, d_model)
    assert jnp.allclose(out_bf16, ref, atol=6e-2, rtol=6e-2), "bf16 path mismatch vs reference"

    print("KERNEL_OK")
</pallas_src>

<mosaic_0001>
module attributes {stable_mosaic.version = 11 : i64} {
  func.func @mha_head_kernel(%arg0: i32, %arg1: i32, %arg2: memref<1x8x32xf32, #tpu.memory_space<vmem>>, %arg3: memref<1x8x32xf32, #tpu.memory_space<vmem>>, %arg4: memref<1x8x32xf32, #tpu.memory_space<vmem>>, %arg5: memref<1x32x8xf32, #tpu.memory_space<vmem>>, %arg6: memref<1x32x8xf32, #tpu.memory_space<vmem>>, %arg7: memref<1x32x8xf32, #tpu.memory_space<vmem>>, %arg8: memref<1x8x32xf32, #tpu.memory_space<vmem>>, %arg9: memref<1x1x8xf32, #tpu.memory_space<vmem>>, %arg10: memref<1x1x8xf32, #tpu.memory_space<vmem>>, %arg11: memref<1x1x8xf32, #tpu.memory_space<vmem>>, %arg12: memref<1x32xf32, #tpu.memory_space<vmem>>, %arg13: memref<1x8x32xf32, #tpu.memory_space<vmem>>, %arg14: memref<8x32xf32, #tpu.memory_space<vmem>>, %arg15: memref<8x8xf32, #tpu.memory_space<vmem>>, %arg16: memref<8x8xf32, #tpu.memory_space<vmem>>) attributes {dimension_semantics = [#tpu.dimension_semantics<parallel>, #tpu.dimension_semantics<arbitrary>], iteration_bounds = array<i64: 2, 4>, scalar_prefetch = 0 : i64, scratch_operands = 3 : i64, tpu.core_type = #tpu.core_type<tc>, window_params = [{transform_indices = @transform_0, window_bounds = array<i64: 1, 8, 32>}, {transform_indices = @transform_1, window_bounds = array<i64: 1, 8, 32>}, {transform_indices = @transform_2, window_bounds = array<i64: 1, 8, 32>}, {transform_indices = @transform_3, window_bounds = array<i64: 1, 32, 8>}, {transform_indices = @transform_4, window_bounds = array<i64: 1, 32, 8>}, {transform_indices = @transform_5, window_bounds = array<i64: 1, 32, 8>}, {transform_indices = @transform_6, window_bounds = array<i64: 1, 8, 32>}, {transform_indices = @transform_7, window_bounds = array<i64: 1, 1, 8>}, {transform_indices = @transform_8, window_bounds = array<i64: 1, 1, 8>}, {transform_indices = @transform_9, window_bounds = array<i64: 1, 1, 8>}, {pipeline_mode = #tpu.pipeline_mode<synchronous>, transform_indices = @transform_10, window_bounds = array<i64: 1, 32>}, {transform_indices = @transform_11, window_bounds = array<i64: 1, 8, 32>}]} {
    %c0_i32 = arith.constant 0 : i32
    %0 = arith.cmpi eq, %arg1, %c0_i32 : i32
    %1 = arith.extui %0 : i1 to i32
    %c0_i32_0 = arith.constant 0 : i32
    %2 = arith.cmpi ne, %1, %c0_i32_0 : i32
    scf.if %2 {
      %c0_52 = arith.constant 0 : index
      %c0_53 = arith.constant 0 : index
      %70 = vector.load %arg12[%c0_52, %c0_53] : memref<1x32xf32, #tpu.memory_space<vmem>>, vector<1x32xf32>
      %71 = vector.shape_cast %70 : vector<1x32xf32> to vector<1x32xf32>
      %72 = vector.broadcast %71 : vector<1x32xf32> to vector<8x32xf32>
      %c0_54 = arith.constant 0 : index
      %c0_55 = arith.constant 0 : index
      %73 = vector.load %arg14[%c0_54, %c0_55] : memref<8x32xf32, #tpu.memory_space<vmem>>, vector<8x32xf32>
      tpu.vector_store %arg14[%c0_54, %c0_55], %72 {strides = array<i32>} : memref<8x32xf32, #tpu.memory_space<vmem>>, vector<8x32xf32>,
    } else {
    }
    %c0 = arith.constant 0 : index
    %c0_1 = arith.constant 0 : index
    %c0_2 = arith.constant 0 : index
    %3 = vector.load %arg2[%c0, %c0_1, %c0_2] : memref<1x8x32xf32, #tpu.memory_space<vmem>>, vector<1x8x32xf32>
    %4 = vector.shape_cast %3 : vector<1x8x32xf32> to vector<8x32xf32>
    %c0_3 = arith.constant 0 : index
    %c0_4 = arith.constant 0 : index
    %c0_5 = arith.constant 0 : index
    %5 = vector.load %arg3[%c0_3, %c0_4, %c0_5] : memref<1x8x32xf32, #tpu.memory_space<vmem>>, vector<1x8x32xf32>
    %6 = vector.shape_cast %5 : vector<1x8x32xf32> to vector<8x32xf32>
    %c0_6 = arith.constant 0 : index
    %c0_7 = arith.constant 0 : index
    %c0_8 = arith.constant 0 : index
    %7 = vector.load %arg4[%c0_6, %c0_7, %c0_8] : memref<1x8x32xf32, #tpu.memory_space<vmem>>, vector<1x8x32xf32>
    %8 = vector.shape_cast %7 : vector<1x8x32xf32> to vector<8x32xf32>
    %c0_9 = arith.constant 0 : index
    %c0_10 = arith.constant 0 : index
    %c0_11 = arith.constant 0 : index
    %9 = vector.load %arg5[%c0_9, %c0_10, %c0_11] : memref<1x32x8xf32, #tpu.memory_space<vmem>>, vector<1x32x8xf32>
    %10 = vector.shape_cast %9 : vector<1x32x8xf32> to vector<32x8xf32>
    %cst = arith.constant dense<0.000000e+00> : vector<8x8xf32>
    %11 = tpu.matmul %4, %10, %cst {dimension_numbers = #tpu.dot_dimension_numbers<[1], [0], [0], [1], [0, 0, 1, 1], [], []>} : vector<8x32xf32>, vector<32x8xf32>, vector<8x8xf32> -> vector<8x8xf32>
    %c0_12 = arith.constant 0 : index
    %c0_13 = arith.constant 0 : index
    %c0_14 = arith.constant 0 : index
    %12 = vector.load %arg9[%c0_12, %c0_13, %c0_14] : memref<1x1x8xf32, #tpu.memory_space<vmem>>, vector<1x1x8xf32>
    %13 = vector.shape_cast %12 : vector<1x1x8xf32> to vector<1x8xf32>
    %14 = vector.broadcast %13 : vector<1x8xf32> to vector<8x8xf32>
    %15 = arith.addf %11, %14 : vector<8x8xf32>
    %c0_15 = arith.constant 0 : index
    %c0_16 = arith.constant 0 : index
    %c0_17 = arith.constant 0 : index
    %16 = vector.load %arg6[%c0_15, %c0_16, %c0_17] : memref<1x32x8xf32, #tpu.memory_space<vmem>>, vector<1x32x8xf32>
    %17 = vector.shape_cast %16 : vector<1x32x8xf32> to vector<32x8xf32>
    %cst_18 = arith.constant dense<0.000000e+00> : vector<8x8xf32>
    %18 = tpu.matmul %6, %17, %cst_18 {dimension_numbers = #tpu.dot_dimension_numbers<[1], [0], [0], [1], [0, 0, 1, 1], [], []>} : vector<8x32xf32>, vector<32x8xf32>, vector<8x8xf32> -> vector<8x8xf32>
    %c0_19 = arith.constant 0 : index
    %c0_20 = arith.constant 0 : index
    %c0_21 = arith.constant 0 : index
    %19 = vector.load %arg10[%c0_19, %c0_20, %c0_21] : memref<1x1x8xf32, #tpu.memory_space<vmem>>, vector<1x1x8xf32>
    %20 = vector.shape_cast %19 : vector<1x1x8xf32> to vector<1x8xf32>
    %21 = vector.broadcast %20 : vector<1x8xf32> to vector<8x8xf32>
    %22 = arith.addf %18, %21 : vector<8x8xf32>
    %c0_22 = arith.constant 0 : index
    %c0_23 = arith.constant 0 : index
    %23 = vector.load %arg15[%c0_22, %c0_23] : memref<8x8xf32, #tpu.memory_space<vmem>>, vector<8x8xf32>
    tpu.vector_store %arg15[%c0_22, %c0_23], %22 {strides = array<i32>} : memref<8x8xf32, #tpu.memory_space<vmem>>, vector<8x8xf32>,
    %c0_24 = arith.constant 0 : index
    %c0_25 = arith.constant 0 : index
    %c0_26 = arith.constant 0 : index
    %24 = vector.load %arg7[%c0_24, %c0_25, %c0_26] : memref<1x32x8xf32, #tpu.memory_space<vmem>>, vector<1x32x8xf32>
    %25 = vector.shape_cast %24 : vector<1x32x8xf32> to vector<32x8xf32>
    %cst_27 = arith.constant dense<0.000000e+00> : vector<8x8xf32>
    %26 = tpu.matmul %8, %25, %cst_27 {dimension_numbers = #tpu.dot_dimension_numbers<[1], [0], [0], [1], [0, 0, 1, 1], [], []>} : vector<8x32xf32>, vector<32x8xf32>, vector<8x8xf32> -> vector<8x8xf32>
    %c0_28 = arith.constant 0 : index
    %c0_29 = arith.constant 0 : index
    %c0_30 = arith.constant 0 : index
    %27 = vector.load %arg11[%c0_28, %c0_29, %c0_30] : memref<1x1x8xf32, #tpu.memory_space<vmem>>, vector<1x1x8xf32>
    %28 = vector.shape_cast %27 : vector<1x1x8xf32> to vector<1x8xf32>
    %29 = vector.broadcast %28 : vector<1x8xf32> to vector<8x8xf32>
    %30 = arith.addf %26, %29 : vector<8x8xf32>
    %c0_31 = arith.constant 0 : index
    %c0_32 = arith.constant 0 : index
    %31 = vector.load %arg16[%c0_31, %c0_32] : memref<8x8xf32, #tpu.memory_space<vmem>>, vector<8x8xf32>
    tpu.vector_store %arg16[%c0_31, %c0_32], %30 {strides = array<i32>} : memref<8x8xf32, #tpu.memory_space<vmem>>, vector<8x8xf32>,
    %cst_33 = arith.constant 0xFF800000 : f32
    %32 = vector.broadcast %cst_33 : f32 to vector<8x1xf32>
    %cst_34 = arith.constant 0.000000e+00 : f32
    %33 = vector.broadcast %cst_34 : f32 to vector<8x1xf32>
    %cst_35 = arith.constant 0.000000e+00 : f32
    %34 = vector.broadcast %cst_35 : f32 to vector<8x8xf32>
    %c0_i32_36 = arith.constant 0 : i32
    %c8_i32 = arith.constant 8 : i32
    %35 = arith.muli %c0_i32_36, %c8_i32 : i32
    %36 = tpu.assume_multiple %35, 8 : i32
    %37 = arith.index_cast %36 : i32 to index
    %c0_37 = arith.constant 0 : index
    %38 = vector.load %arg15[%37, %c0_37] : memref<8x8xf32, #tpu.memory_space<vmem>>, vector<8x8xf32>
    %39 = arith.index_cast %36 : i32 to index
    %c0_38 = arith.constant 0 : index
    %40 = vector.load %arg16[%39, %c0_38] : memref<8x8xf32, #tpu.memory_space<vmem>>, vector<8x8xf32>
    %cst_39 = arith.constant dense<0.000000e+00> : vector<8x8xf32>
    %41 = tpu.matmul %15, %38, %cst_39 {dimension_numbers = #tpu.dot_dimension_numbers<[1], [1], [0], [0], [0, 0, 1, 0], [], []>} : vector<8x8xf32>, vector<8x8xf32>, vector<8x8xf32> -> vector<8x8xf32>
    %cst_40 = arith.constant dense<0xFF800000> : vector<8xf32>
    %42 = vector.multi_reduction <maximumf>, %41, %cst_40 [1] : vector<8x8xf32> to vector<8xf32>
    %43 = vector.shape_cast %42 : vector<8xf32> to vector<8x1xf32>
    %44 = arith.maximumf %32, %43 : vector<8x1xf32>
    %45 = arith.subf %32, %44 : vector<8x1xf32>
    %46 = math.exp %45 : vector<8x1xf32>
    %47 = vector.broadcast %44 : vector<8x1xf32> to vector<8x8xf32>
    %48 = arith.subf %41, %47 : vector<8x8xf32>
    %49 = math.exp %48 : vector<8x8xf32>
    %50 = arith.mulf %46, %33 : vector<8x1xf32>
    %cst_41 = arith.constant dense<0.000000e+00> : vector<8xf32>
    %51 = vector.multi_reduction <add>, %49, %cst_41 [1] : vector<8x8xf32> to vector<8xf32>
    %52 = vector.shape_cast %51 : vector<8xf32> to vector<8x1xf32>
    %53 = arith.addf %50, %52 : vector<8x1xf32>
    %54 = vector.broadcast %46 : vector<8x1xf32> to vector<8x8xf32>
    %55 = arith.mulf %54, %34 : vector<8x8xf32>
    %cst_42 = arith.constant dense<0.000000e+00> : vector<8x8xf32>
    %56 = tpu.matmul %49, %40, %cst_42 {dimension_numbers = #tpu.dot_dimension_numbers<[1], [0], [0], [1], [0, 0, 1, 1], [], []>} : vector<8x8xf32>, vector<8x8xf32>, vector<8x8xf32> -> vector<8x8xf32>
    %57 = arith.addf %55, %56 : vector<8x8xf32>
    %c1_i32 = arith.constant 1 : i32
    %58 = tpu.reciprocal %53 {approx = true} : vector<8x1xf32> -> vector<8x1xf32>
    %59 = vector.broadcast %58 : vector<8x1xf32> to vector<8x8xf32>
    %60 = arith.mulf %57, %59 : vector<8x8xf32>
    %c0_43 = arith.constant 0 : index
    %c0_44 = arith.constant 0 : index
    %61 = vector.load %arg14[%c0_43, %c0_44] : memref<8x32xf32, #tpu.memory_space<vmem>>, vector<8x32xf32>
    %c0_45 = arith.constant 0 : index
    %c0_46 = arith.constant 0 : index
    %c0_47 = arith.constant 0 : index
    %62 = vector.load %arg8[%c0_45, %c0_46, %c0_47] : memref<1x8x32xf32, #tpu.memory_space<vmem>>, vector<1x8x32xf32>
    %63 = vector.shape_cast %62 : vector<1x8x32xf32> to vector<8x32xf32>
    %cst_48 = arith.constant dense<0.000000e+00> : vector<8x32xf32>
    %64 = tpu.matmul %60, %63, %cst_48 {dimension_numbers = #tpu.dot_dimension_numbers<[1], [0], [0], [1], [0, 0, 1, 1], [], []>} : vector<8x8xf32>, vector<8x32xf32>, vector<8x32xf32> -> vector<8x32xf32>
    %65 = arith.addf %61, %64 : vector<8x32xf32>
    %c0_49 = arith.constant 0 : index
    %c0_50 = arith.constant 0 : index
    %66 = vector.load %arg14[%c0_49, %c0_50] : memref<8x32xf32, #tpu.memory_space<vmem>>, vector<8x32xf32>
    tpu.vector_store %arg14[%c0_49, %c0_50], %65 {strides = array<i32>} : memref<8x32xf32, #tpu.memory_space<vmem>>, vector<8x32xf32>,
    %c3_i32 = arith.constant 3 : i32
    %67 = arith.cmpi eq, %arg1, %c3_i32 : i32
    %68 = arith.extui %67 : i1 to i32
    %c0_i32_51 = arith.constant 0 : i32
    %69 = arith.cmpi ne, %68, %c0_i32_51 : i32
    scf.if %69 {
      %c0_52 = arith.constant 0 : index
      %c0_53 = arith.constant 0 : index
      %70 = vector.load %arg14[%c0_52, %c0_53] : memref<8x32xf32, #tpu.memory_space<vmem>>, vector<8x32xf32>
      %c0_54 = arith.constant 0 : index
      %c0_55 = arith.constant 0 : index
      %c0_56 = arith.constant 0 : index
      %71 = vector.load %arg13[%c0_54, %c0_55, %c0_56] : memref<1x8x32xf32, #tpu.memory_space<vmem>>, vector<1x8x32xf32>
      %72 = vector.shape_cast %71 : vector<1x8x32xf32> to vector<8x32xf32>
      %73 = vector.shape_cast %70 : vector<8x32xf32> to vector<1x8x32xf32>
      tpu.vector_store %arg13[%c0_54, %c0_55, %c0_56], %73 {strides = array<i32>} : memref<1x8x32xf32, #tpu.memory_space<vmem>>, vector<1x8x32xf32>,
    } else {
    }
    return
  }
  func.func @transform_0(%arg0: i32, %arg1: i32) -> (i32, i32, i32) {
    %c0_i32 = arith.constant 0 : i32
    %c0_i32_0 = arith.constant 0 : i32
    %c0_i32_1 = arith.constant 0 : i32
    return %arg0, %c0_i32, %c0_i32_0 : i32, i32, i32
  }
  func.func @transform_1(%arg0: i32, %arg1: i32) -> (i32, i32, i32) {
    %c0_i32 = arith.constant 0 : i32
    %c0_i32_0 = arith.constant 0 : i32
    %c0_i32_1 = arith.constant 0 : i32
    return %arg0, %c0_i32, %c0_i32_0 : i32, i32, i32
  }
  func.func @transform_2(%arg0: i32, %arg1: i32) -> (i32, i32, i32) {
    %c0_i32 = arith.constant 0 : i32
    %c0_i32_0 = arith.constant 0 : i32
    %c0_i32_1 = arith.constant 0 : i32
    return %arg0, %c0_i32, %c0_i32_0 : i32, i32, i32
  }
  func.func @transform_3(%arg0: i32, %arg1: i32) -> (i32, i32, i32) {
    %c0_i32 = arith.constant 0 : i32
    %c0_i32_0 = arith.constant 0 : i32
    %c0_i32_1 = arith.constant 0 : i32
    return %arg1, %c0_i32, %c0_i32_0 : i32, i32, i32
  }
  func.func @transform_4(%arg0: i32, %arg1: i32) -> (i32, i32, i32) {
    %c0_i32 = arith.constant 0 : i32
    %c0_i32_0 = arith.constant 0 : i32
    %c0_i32_1 = arith.constant 0 : i32
    return %arg1, %c0_i32, %c0_i32_0 : i32, i32, i32
  }
  func.func @transform_5(%arg0: i32, %arg1: i32) -> (i32, i32, i32) {
    %c0_i32 = arith.constant 0 : i32
    %c0_i32_0 = arith.constant 0 : i32
    %c0_i32_1 = arith.constant 0 : i32
    return %arg1, %c0_i32, %c0_i32_0 : i32, i32, i32
  }
  func.func @transform_6(%arg0: i32, %arg1: i32) -> (i32, i32, i32) {
    %c0_i32 = arith.constant 0 : i32
    %c0_i32_0 = arith.constant 0 : i32
    %c0_i32_1 = arith.constant 0 : i32
    return %arg1, %c0_i32, %c0_i32_0 : i32, i32, i32
  }
  func.func @transform_7(%arg0: i32, %arg1: i32) -> (i32, i32, i32) {
    %c0_i32 = arith.constant 0 : i32
    %c0_i32_0 = arith.constant 0 : i32
    %c0_i32_1 = arith.constant 0 : i32
    return %arg1, %c0_i32, %c0_i32_0 : i32, i32, i32
  }
  func.func @transform_8(%arg0: i32, %arg1: i32) -> (i32, i32, i32) {
    %c0_i32 = arith.constant 0 : i32
    %c0_i32_0 = arith.constant 0 : i32
    %c0_i32_1 = arith.constant 0 : i32
    return %arg1, %c0_i32, %c0_i32_0 : i32, i32, i32
  }
  func.func @transform_9(%arg0: i32, %arg1: i32) -> (i32, i32, i32) {
    %c0_i32 = arith.constant 0 : i32
    %c0_i32_0 = arith.constant 0 : i32
    %c0_i32_1 = arith.constant 0 : i32
    return %arg1, %c0_i32, %c0_i32_0 : i32, i32, i32
  }
  func.func @transform_10(%arg0: i32, %arg1: i32) -> (i32, i32) {
    %c0_i32 = arith.constant 0 : i32
    %c0_i32_0 = arith.constant 0 : i32
    %c0_i32_1 = arith.constant 0 : i32
    return %c0_i32, %c0_i32_0 : i32, i32
  }
  func.func @transform_11(%arg0: i32, %arg1: i32) -> (i32, i32, i32) {
    %c0_i32 = arith.constant 0 : i32
    %c0_i32_0 = arith.constant 0 : i32
    %c0_i32_1 = arith.constant 0 : i32
    return %arg0, %c0_i32, %c0_i32_0 : i32, i32, i32
  }
}

</mosaic_0001>

<bundles_post_ra>
// kernel: tpu_custom_call.1
= control target key start
LH: loop header
LB: loop body
LE: loop exit
PB: predicated region body
PF: predicated region fallthrough
CT: control target
= control target key end

     0   :  { %s1857_s0 = inlined_call_operand.vmem [shape: f32[2,8,32], index: 0, kind: input, shape index: {}]   ;;  %s1858_s1 = inlined_call_operand.vmem [shape: f32[2,8,32], index: 1, kind: input, shape index: {}]   ;;  %s1859_s2 = inlined_call_operand.vmem [shape: f32[2,8,32], index: 2, kind: input, shape index: {}]   ;;  %s1860_s3 = inlined_call_operand.vmem [shape: f32[4,32,8], index: 3, kind: input, shape index: {}]   ;;  %s1861_s4 = inlined_call_operand.vmem [shape: f32[4,32,8], index: 4, kind: input, shape index: {}]   ;;  %s1862_s5 = inlined_call_operand.vmem [shape: f32[4,32,8], index: 5, kind: input, shape index: {}]   ;;  %s1863_s6 = inlined_call_operand.vmem [shape: f32[4,8,32], index: 6, kind: input, shape index: {}]   ;;  %s1864_s7 = inlined_call_operand.vmem [shape: f32[4,1,8], index: 7, kind: input, shape index: {}]   ;;  %s1865_s8 = inlined_call_operand.vmem [shape: f32[4,1,8], index: 8, kind: input, shape index: {}]   ;;  %s1866_s9 = inlined_call_operand.vmem [shape: f32[4,1,8], index: 9, kind: input, shape index: {}]   ;;  %s1867_s10 = inlined_call_operand.vmem [shape: f32[1,32], index: 10, kind: input, shape index: {}]   ;;  %s1868_s11 = inlined_call_operand.hbm [shape: f32[2,8,32], index: 11, kind: output, shape index: {}]  }
   0x1   :  { %1883 = sst [smem:[#allocation20_spill]] %s1860_s3 }
   0x2   :  { %1884 = sst [smem:[#allocation21_spill]] %s1861_s4 }
   0x3   :  { %1885 = sst [smem:[#allocation22_spill]] %s1868_s11 }
   0x4   :  { %16 = vsyncpa [#allocation6], 0 }
   0x5   :  { %18 = vsyncpa [#allocation6 + $0x1], 0  ;;  %s1616_s17 = smov 0   ;;  %s1618_s18 = smov 0  }
   0x6   :  { %s1620_s19 = smov 0   ;;  %s1622_s20 = smov 0  }
   0x7   :  { %s1624_s21 = smov 0   ;;  %s1626_s22 = smov 0  }
   0x8   :  { %s1628_s23 = smov 0   ;;  %s1630_s24 = smov 0  }
   0x9 LB: > { %1886 = sst [smem:[#allocation8_spill]] %s1522_s17  ;;  %s1253_s25 = sadd.s32 4294967295, %s1550_s24   ;;  %s1550_s24 = sphi %s1630_s24, %s24_s24   ;;  %s1546_s23 = sphi %s1628_s23, %s1919_s23   ;;  %s1542_s22 = sphi %s1626_s22, %s1918_s22   ;;  %s1538_s21 = sphi %s1624_s21, %s1917_s21   ;;  %s1534_s20 = sphi %s1622_s20, %s1916_s20   ;;  %s1530_s19 = sphi %s1620_s19, %s1915_s19   ;;  %s1526_s18 = sphi %s1618_s18, %s1914_s18   ;;  %s1522_s17 = sphi %s1616_s17, %s1913_s17  }
   0xa   : > { %1887 = sst [smem:[#allocation9_spill]] %s1526_s18  ;;  %s1254_s26 = sadd.s32 4294967294, %s1550_s24  }
   0xb   : > { %1888 = sst [smem:[#allocation10_spill]] %s1530_s19  ;;  %s33_s27 = sadd.s32 1, %s1542_s22 }
   0xc   : > { %1889 = sst [smem:[#allocation11_spill]] %s1538_s21  ;;  %p34_p0 = scmp.ge.s32.totalorder %s33_s27, 4 }
   0xd   : > { %1890 = sst [smem:[#allocation12_spill]] %s1542_s22  ;;  %s36_s28 = sadd.s32 1, %s1546_s23 }
   0xe   : > { %1891 = sst [smem:[#allocation13_spill]] %s1546_s23  ;;  %p334_p1 = scmp.ne.s32.totalorder %s1530_s19, %s1526_s18 }
   0xf   : > { %1892 = sst [smem:[#allocation14_spill]] %s1550_s24  ;;  %p335_p2 = scmp.eq.s32.totalorder %s1253_s25, 7 }
  0x10   : > { %s1921_s27 = smov (%p34_p0, %s33_s27), 0  ;;  %s1923_s28 = smov (!%p34_p0, %s36_s28), %s1546_s23 }
  0x11   : > { %1893 = sst [smem:[#allocation15_spill]] %s1921_s27  ;;  %p1665_p3 = por %p335_p2, %p334_p1 }
  0x12   : > { %p340_p4 = scmp.ne.s32.totalorder %s1526_s18, %s1522_s17  ;;  %p38_p5 = scmp.ge.s32.totalorder %s1923_s28, 2 }
  0x13   : > { %s1894_s29 = scalar_select %p1665_p3, 1, 0 }
  0x14   : > { %p341_p6 = scmp.eq.s32.totalorder %s1254_s26, 7  ;;  %p1257_p7 = scmp.ge.s32.totalorder %s1550_s24, 1 }
  0x15   : > { %1895 = sst [smem:[#allocation16_spill]] %s1894_s29  ;;  %p432_p8 = scmp.lt.s32.totalorder %s1550_s24, 9 }
  0x16   : > { %s1925_s28 = smov (%p38_p5, %s1923_s28), 0  ;;  %p1675_p9 = por %p341_p6, %p340_p4 }
  0x17   : > { %1896 = sst [smem:[#allocation17_spill]] %s1925_s28  ;;  %p433_p10 = pnand %p1257_p7, %p432_p8 }
  0x18   : > { %s1897_s30 = scalar_select %p1675_p9, 1, 0 }
  0x19   : > { %s321_s12 = ssub.s32 %s1546_s23, %s1925_s28  ;;  %s324_s13 = sadd.s32 1, %s1530_s19 }
  0x1a   : > { %1898 = sst [smem:[#allocation18_spill]] %s1897_s30  ;;  %p322_p11 = scmp.eq.s32.totalorder %s321_s12, 0 }
  0x1b   : > { %436 = sbr.rel (%p433_p10) target bundleno = 1113 (0x459), region = 64  ;;  %s1870_s15 = sand.u32 (!%p433_p10), 1, %s1526_s18  }
  0x1c   : > { %s1683_s14 = scalar_select %p322_p11, %s1530_s19, %s324_s13  }
  0x1d   : > { %p507_p12 = scmp.lt.s32.totalorder (!%p433_p10), %s1538_s21, 1  ;;  %s1689_s16 = sshll.u32 (!%p433_p10), %s1870_s15, 3 }
  0x1e   : > { %1899 = sst [smem:[#allocation19_spill]] %s1683_s14  ;;  %p519_p13 = scmp.lt.s32.totalorder (!%p433_p10), %s1534_s20, 3 }
  0x1f   : > { %s1900_s3 = sld [smem:[#allocation20_spill]] (!%p433_p10)  ;;  %s1901_s4 = sld [smem:[#allocation21_spill]] (!%p433_p10) }
  0x20   : > { %p1269_p0 = scmp.ne.s32.totalorder (!%p433_p10), %s1534_s20, 0 }
  0x22   : > { %s508_s25 = scalar_select %p507_p12, %s1538_s21, 1 }
  0x23   : > { %s1694_s26 = scalar_select %p519_p13, %s1534_s20, 3 }
  0x24   : > { %s1696_s12 = sshll.u32 %s508_s25, 3  ;;  %550 = sbr.rel (%p1269_p0) target bundleno = 43 (0x2b), region = 68  ;;  %v1270_v0 = vld [vmem:[%s1867_s10] ss:$0 sm:$0xff] (!%p1269_p0)  ;;  %vm558_vm0 = vcmask (!%p1269_p0), 261120  }
  0x25   : > { %s1286_s17 = sshll.u32 %s1694_s26, 5  ;;  %s1268_s23 = sshll.u32 %s1694_s26, 3  ;;  %559 = vst.msk [vmem:[#allocation2] sm:$0xff] (!%p1269_p0), %vm558_vm0, %v1270_v0 }
  0x26   : > { %s523_s25 = scalar_lea.vmem %s1900_s3, %s1286_s17  ;;  %s528_s28 = scalar_lea.vmem %s1901_s4, %s1286_s17 }
  0x27   : > { %s1720_s15 = scalar_lea.vmem %s1862_s5, %s1286_s17  ;;  %s1726_s19 = scalar_lea.vmem %s1863_s6, %s1268_s23 }
  0x28   : > { %s540_s11 = scalar_lea.vmem %s1864_s7, %s1694_s26  ;;  %s543_s18 = scalar_lea.vmem %s1865_s8, %s1694_s26 }
  0x29   : > { %s546_s21 = scalar_lea.vmem %s1866_s9, %s1694_s26  ;;  %s506_s17 = scalar_lea.vmem [#allocation5], %s1689_s16 }
  0x2b PF: > { %v648_v1 = vld [vmem:[%s528_s28] sm:$0xff]  ;;  %v649_v2 = vld [vmem:[%s528_s28 + $0x8] sm:$0xff]  ;;  %v650_v3 = vld [vmem:[%s528_s28 + $0x10] sm:$0xff]  ;;  %v1552_v4 = vmov 0.0|0.0   ;;  %vm1553_vm1 = vmmov 0   ;;  %v1554_v7 = vmov 0.0   ;;  %s1902_s30 = scalar_lea.vmem %s1858_s1, %s1696_s12  ;;  %s1903_s23 = scalar_lea.vmem %s1857_s0, %s1696_s12 }
  0x2c   : > { %1364 = vmatprep.subr.bf16.mxu1 %v1552_v4  ;;  %v1365_v5 = vpack.c.bf16 %v649_v2, %v648_v1  ;;  %v651_v6 = vld [vmem:[%s528_s28 + $0x18] sm:$0xff]  ;;  %1329 = vmatprep.mubr.msk.f32.mxu1 %vm1553_vm1, %v1554_v7  ;;  %v563_v8 = vld [vmem:[%s523_s25] sm:$0xff]  ;;  %v564_v9 = vld [vmem:[%s523_s25 + $0x8] sm:$0xff]  ;;  %vm574_vm2 = vcmask 261120   ;;  %s1904_s24 = scalar_lea.vmem %s1859_s2, %s1696_s12  ;;  %vm732_vm3 = vcmask 64512   ;;  %p1281_p1 = scmp.ne.s32.totalorder %s1534_s20, 3 }
  0x2d   : > { %1358 = vmatprep.subr.bf16.mxu0 %v1552_v4  ;;  %v565_v10 = vld [vmem:[%s523_s25 + $0x10] sm:$0xff]  ;;  %v566_v11 = vld [vmem:[%s523_s25 + $0x18] sm:$0xff]  ;;  %1318 = vmatprep.mubr.msk.f32.mxu0 %vm1553_vm1, %v1554_v7  ;;  %v1368_v12 = vpack.c.bf16 %v651_v6, %v650_v3  ;;  %v1359_v13 = vpack.c.bf16 %v564_v9, %v563_v8  ;;  %v561_v15 = vld [vmem:[%s1902_s30] sm:$0xff] }
  0x2e   : > { %1366 = vmatpush3.bf16.msra.mxu1 %v1365_v5  ;;  %v1362_v14 = vpack.c.bf16 %v566_v11, %v565_v10  ;;  %v560_v16 = vld [vmem:[%s1903_s23] sm:$0xff]  ;;  %v735_v18 = vld [vmem:[%s1720_s15 + $0x8] sm:$0xff]  ;;  %v736_v19 = vld [vmem:[%s1720_s15 + $0x10] sm:$0xff] }
  0x2f   : > { %1367 = vmatprep.subr.bf16.mxu1 %v1552_v4  ;;  %1360 = vmatpush3.bf16.msra.mxu0 %v1359_v13  ;;  %v734_v17 = vld [vmem:[%s1720_s15] sm:$0xff]  ;;  %v737_v21 = vld [vmem:[%s1720_s15 + $0x18] sm:$0xff] }
  0x30   : > { %1361 = vmatprep.subr.bf16.mxu0 %v1552_v4  ;;  %v1371_v20 = vpack.c.bf16 %v735_v18, %v734_v17  ;;  %v1374_v22 = vpack.c.bf16 %v737_v21, %v736_v19  ;;  %v562_v23 = vld [vmem:[%s1904_s24] sm:$0xff] }
  0x31   : > { %v1273_v24 = vld [vmem:[%s543_s18] ss:$0 sm:$0xff] }
  0x32   : > { %1369 = vmatpush3.bf16.msra.mxu1 %v1368_v12  ;;  %v1271_v30 = vld [vmem:[%s540_s11] ss:$0 sm:$0xff] }
  0x33   : > { %1343 = vmatprep.subr.mxu1 %v1554_v7  ;;  %1363 = vmatpush3.bf16.msra.mxu0 %v1362_v14  ;;  %v1275_v37 = vld [vmem:[%s546_s21] ss:$0 sm:$0xff] }
  0x34   : > { %1370 = vmatprep.subr.bf16.mxu0 %v1552_v4  ;;  %v988_v46 = vld [vmem:[%s1726_s19] sm:$0xff] }
  0x35   : > { %1330 = vmatmul.mubr.msk.f32.vlgmr.msra.gmra.mrb[0].mxu1 %vm574_vm2, %v561_v15  ;;  %v987_v58 = vld [vmem:[#allocation2] sm:$0xff] }
  0x36   : > { %1345 = vmatprep.mubr.msk.f32.mxu1 %vm1553_vm1, %v1554_v7  ;;  %1319 = vmatmul.mubr.msk.f32.vlgmr.msra.gmra.mrb[0].mxu0 %vm574_vm2, %v560_v16 }
  0x37   : > { %1340 = vmatprep.mubr.msk.f32.mxu0 %vm1553_vm1, %v1554_v7  ;;  %1372 = vmatpush3.bf16.msra.mxu0 %v1371_v20 }
  0x38   : > { %1373 = vmatprep.subr.bf16.mxu0 %v1552_v4 }
  0x3b   : > { %1375 = vmatpush3.bf16.msra.mxu0 %v1374_v22 }
  0x3c   : > { %1353 = vmatprep.subr.mxu0 %v1554_v7 }
  0x3e   : > { %1341 = vmatmul.mubr.msk.f32.vlgmr.msra.gmra.mrb[2].mxu0 %vm574_vm2, %v562_v23 }
  0x3f   : > { %1355 = vmatprep.mubr.msk.f32.mxu0 %vm1553_vm1, %v1554_v7  ;;  %1354 = vmatpush3.msra.mxu0 %v988_v46 }
 0x108   : > { %v728_v25 = vpop.f32.mrb[0].mxu1 }
 0x109   : > { %v729_v26 = vadd.f32 %v1273_v24, %v728_v25  ;;  %v1331_v27 = vpop.f32.mrb[1].mxu1  ;;  %v644_v28 = vpop.f32.mrb[0].mxu0 }
 0x10a   : > { %v1320_v29 = vpop.f32.mrb[1].mxu0  ;;  %v645_v31 = vadd.f32 %v1271_v30, %v644_v28 }
 0x10b   : > { %733 = vst.msk [vmem:[#allocation3] sm:$0xff] %vm732_vm3, %v729_v26 }
 0x111   : > { %v814_v36 = vpop.f32.mrb[2].mxu0 }
 0x112   : > { %v819_v32 = vld [vmem:[#allocation3] sm:$0xff]  ;;  %v1342_v38 = vpop.f32.mrb[3].mxu0  ;;  %v815_v39 = vadd.f32 %v1275_v37, %v814_v36 }
 0x113   : > { %1344 = vmatpush3.xpose.msk.msra.mxu1 %vm732_vm3, %v819_v32 }
 0x114   : > { %1348 = vmatprep.subr.mxu1 %v1554_v7  ;;  %818 = vst.msk [vmem:[#allocation4] sm:$0xff] %vm732_vm3, %v815_v39 }
 0x116   : > { %1346 = vmatmul.mubr.msk.f32.vlgmr.msra.gmra.mrb[2].mxu1 %vm732_vm3, %v645_v31 }
 0x117   : > { %1350 = vmatprep.mubr.msk.f32.mxu1 %vm1553_vm1, %v1554_v7 }
 0x11b   : > { %v820_v40 = vld [vmem:[#allocation4] sm:$0xff] }
 0x11c   : > { %1349 = vmatpush3.msra.mxu1 %v820_v40 }
 0x1e9   : > { %v893_v33 = vpop.f32.mrb[2].mxu1 }
 0x1ea   : > { %v1347_v34 = vpop.f32.mrb[3].mxu1  ;;  %v897_v35 = vsel %vm732_vm3, %v893_v33, -inf }
 0x1eb   : > { %898 = vmax.xlane.f32.xlu0 %v897_v35 }
 0x278   : > { %v899_v41 = vpop.xlane.xlu0 %898 }
 0x279   : > { %v903_v42 = vsub.f32 %v893_v33, %v899_v41  ;;  %v900_v47 = vsub.f32 -inf, %v899_v41 }
 0x27b   : > { %v904_v43 = vmul.f32 1.442695, %v903_v42  ;;  %v901_v48 = vmul.f32 1.442695, %v900_v47 }
 0x27d   : > { %1450 = vpow2.f32 %v904_v43 }
 0x27e   : > { %1452 = vpow2.f32 %v901_v48 }
 0x287   : > { %v1451_v44 = vpop.eup %1450 }
 0x288   : > { %1351 = vmatmul.mubr.msk.f32.vlgmr.msra.gmra.mrb[4].mxu1 %vm732_vm3, %v1451_v44  ;;  %v907_v45 = vsel %vm732_vm3, %v1451_v44, 0.0  ;;  %v1453_v49 = vpop.eup %1452 }
 0x289   : > { %908 = vadd.xlane.f32.xlu0 %v907_v45  ;;  %v906_v51 = vmul.f32 0.0, %v1453_v49 }
 0x316   : > { %v909_v50 = vpop.xlane.xlu0 %908 }
 0x317   : > { %v910_v52 = vadd.f32 %v909_v50, %v906_v51 }
 0x319   : > { %1454 = vrcp.f32 %v910_v52 }
 0x323   : > { %v1455_v56 = vpop.eup %1454 }
 0x35b   : > { %v980_v53 = vpop.f32.mrb[4].mxu1 }
 0x35c   : > { %v984_v54 = vadd.f32 %v980_v53, %v906_v51  ;;  %v1352_v55 = vpop.f32.mrb[5].mxu1 }
 0x35e   : > { %v986_v57 = vmul.f32 %v1455_v56, %v984_v54 }
 0x360   : > { %1356 = vmatmul.mubr.msk.f32.vlgmr.msra.gmra.mrb[4].mxu0 %vm732_vm3, %v986_v57 }
 0x430   : > { %1067 = sbr.rel (%p1281_p1) target bundleno = 1087 (0x43f), region = 72 }
 0x433   : > { %v1058_v59 = vpop.f32.mrb[4].mxu0 }
 0x434   : > { %v1062_v60 = vadd.f32 %v1058_v59, %v987_v58  ;;  %v1357_v61 = vpop.f32.mrb[5].mxu0 }
 0x436   : > { %1063 = vst.msk [vmem:[#allocation2] sm:$0xff] %vm574_vm2, %v1062_v60 }
 0x43d   : > { %v1068_v62 = vld [vmem:[#allocation2] sm:$0xff] }
 0x43e   : > { %1069 = vst.msk [vmem:[%s506_s17] sm:$0xff] %vm574_vm2, %v1068_v62 }
 0x43f PF: > { %s1905_s26 = sld [smem:[#allocation11_spill]]  ;;  %s1908_s30 = sld [smem:[#allocation22_spill]] }
 0x440   : > { %s1906_s19 = sld [smem:[#allocation9_spill]]  ;;  %s1084_s28 = sshll.u32 %s506_s17, 4  ;;  %s1085_s28 = int_to_ptr.vmem [resolvable:$true] %s1084_s28 }
 0x441   : > { %s1456_s27 = scalar_lea.vmem %s1085_s28, 128  ;;  %s1555_s14 = smov [#allocation5]  }
 0x442   : > { %p1457_p2 = scmp.ne.s32.totalorder %s1085_s28, %s1456_s27  ;;  %s1460_s24 = sshll.u32 %s1555_s14, 4  ;;  %s1461_s24 = int_to_ptr.vmem [resolvable:$false] %s1460_s24 }
 0x443   : > { %s1462_s29 = scalar_lea.vmem %s1461_s24, 256  ;;  %p1463_p6 = scmp.lt.s32.totalorder %s1085_s28, %s1461_s24 }
 0x444   : > { %p1458_p4 = pnand %p1457_p2, %p1665_p3  ;;  %p1464_p7 = scmp.lt.s32.totalorder %s1462_s29, %s1456_s27 }
 0x445   : > { %s1283_s21 = sshll.u32 %s1905_s26, 7 }
 0x446   : > { %s1806_s25 = scalar_lea.hbm %s1908_s30, %s1283_s21  ;;  %s1909_s20 = sand.u32 1, %s1906_s19  }
 0x447   : > { %s1071_s23 = scalar_lea.sflag [#allocation6], %s1909_s20  ;;  %p1459_p5 = pneg %p1458_p4 }
 0x448   : > { %p1465_p8 = por %p1464_p7, %p1463_p6 }
 0x44a   : > { %p1466_p10 = pnand %p1465_p8, %p1459_p5 }
 0x44c   : > { %1469 = shalt.err (!%p1466_p10)
}
 0x44d   : > { %s1470_s16 = scalar_lea.hbm %s1806_s25, 128  ;;  %s1474_s15 = scalar_lea.hbm %s1908_s30, 256 }
 0x44e   : > { %p1471_p11 = scmp.ne.s32.totalorder %s1806_s25, %s1470_s16  ;;  %p1475_p0 = scmp.lt.u32.totalorder %s1806_s25, %s1908_s30 }
 0x44f   : > { %p1476_p1 = scmp.lt.u32.totalorder %s1474_s15, %s1470_s16  ;;  %p1478_p4 = scmp.lt.u32.totalorder %s1470_s16, %s1806_s25 }
 0x450   : > { %p1472_p12 = pnand %p1471_p11, %p1665_p3 }
 0x451   : > { %p1477_p2 = por %p1476_p1, %p1475_p0 }
 0x452   : > { %p1473_p13 = pneg %p1472_p12 }
 0x453   : > { %p1479_p5 = por %p1478_p4, %p1477_p2 }
 0x455   : > { %p1480_p6 = pnand %p1479_p5, %p1473_p13 }
 0x457   : > { %1483 = shalt.err (!%p1480_p6)
}
 0x458   : > { %1376 = dma.vmem_to_hbm [thread:$0]  (%p1665_p3), %s1085_s28, 128, %s1806_s25, %s1071_s23  }
 0x459 PF: > { %s1910_s22 = sld [smem:[#allocation14_spill]]  ;;  %s1911_s26 = sld [smem:[#allocation8_spill]] }
 0x45f   : > { %p1382_p7 = scmp.ge.s32.totalorder %s1910_s22, 2  ;;  %s1096_s21 = sand.u32 1, %s1911_s26  }
 0x460   : > { %s1097_s3 = scalar_lea.sflag [#allocation6], %s1096_s21 }
 0x461   : > { %p1379_p8 = pnand %p1382_p7, %p1675_p9 }
 0x463   : > { %1517 = dma.done.wait (!%p1379_p8), %s1097_s3, 128  }
 0x464   : > { %1519 = vsyncadd (!%p1379_p8), %s1097_s3, 4294967168  ;;  %s24_s24 = sadd.s32 1, %s1910_s22   ;;  %s1913_s17 = sld [smem:[#allocation9_spill]] }
 0x465   : > { %p21_p10 = scmp.ge.s32.totalorder %s24_s24, 10   ;;  %s1914_s18 = sld [smem:[#allocation10_spill]] }
 0x466   : > { %s1915_s19 = sld [smem:[#allocation19_spill]]  ;;  %s1916_s20 = sld [smem:[#allocation12_spill]] }
 0x467   : > { %s1917_s21 = sld [smem:[#allocation13_spill]]  ;;  %s1918_s22 = sld [smem:[#allocation15_spill]] }
 0x468   : > { %s1919_s23 = sld [smem:[#allocation17_spill]]  ;;  %23 = sbr.rel (!%p21_p10) target bundleno = 9 (0x9), region = 134 }
 0x46f   :  { %1102 = vsyncpa [#allocation6], 1 }
 0x470   :  { %1104 = vsyncpa [#allocation6 + $0x1], 1 }

</bundles_post_ra>
